<compile_context>
chip_gen: v6e
topology: v6e:2x2x1
jax: 0.10.0
libtpu: 0.0.40
codegen_flags: <defaults>
</compile_context>

<pallas_src>
import math

import jax
import jax.numpy as jnp
from jax.experimental import pallas as pl
from jax.experimental.pallas import tpu as pltpu


# ---------------------------------------------------------------------------
# Generation-aware scoped-VMEM budget (~3/4 of physical, capped at 100 MiB).
# v5e/v6e (128 MiB physical) -> 96 MiB;  v7x (64 MiB per TC) -> 48 MiB.
# ---------------------------------------------------------------------------
_VMEM_LIMIT_CACHE = None


def _vmem_limit_bytes():
    global _VMEM_LIMIT_CACHE
    if _VMEM_LIMIT_CACHE is None:
        try:
            cap = pltpu.get_tpu_info().vmem_capacity_bytes
        except Exception:
            cap = 64 * 1024 * 1024  # conservative (v7x-safe) fallback
        _VMEM_LIMIT_CACHE = min(int(cap) * 3 // 4, 100 * 1024 * 1024)
    return _VMEM_LIMIT_CACHE


def _pick_tile(dim, target, align=1):
    """Largest divisor of `dim` that is <= target and a multiple of `align`.

    Falls back to the full dimension only when no aligned divisor exists
    (full-dim blocks are always layout-legal)."""
    target = min(dim, target)
    for t in range(target, 0, -1):
        if dim % t == 0 and t % align == 0:
            return t
    return dim


# ---------------------------------------------------------------------------
# Tiled dense kernel:  out = x @ w + b   (used for c_attn and c_proj)
# ---------------------------------------------------------------------------
def _dense_kernel(x_ref, w_ref, b_ref, o_ref, acc_ref):
    k = pl.program_id(2)

    @pl.when(k == 0)
    def _init():
        acc_ref[...] = jnp.zeros_like(acc_ref)

    acc_ref[...] += jnp.dot(x_ref[...], w_ref[...],
                            preferred_element_type=jnp.float32)

    @pl.when(k == pl.num_programs(2) - 1)
    def _finalize():
        o_ref[...] = (acc_ref[...] + b_ref[...].astype(jnp.float32)
                      ).astype(o_ref.dtype)


def _dense(x, w, b, out_dtype, tm=512, tn=512, tk=512):
    """x: (M, K), w: (K, N) [in, out], b: (1, N) -> (M, N)."""
    M, K = x.shape
    Kw, N = w.shape
    assert K == Kw
    tm = _pick_tile(M, tm, align=8)      # sublane dim of x / out blocks
    tn = _pick_tile(N, tn, align=128)    # lane dim of w / b / out blocks
    tk = _pick_tile(K, tk, align=128)    # lane dim of x block, sublane of w
    grid = (M // tm, N // tn, K // tk)

    return pl.pallas_call(
        _dense_kernel,
        out_shape=jax.ShapeDtypeStruct((M, N), out_dtype),
        grid_spec=pltpu.PrefetchScalarGridSpec(
            num_scalar_prefetch=0,
            grid=grid,
            in_specs=[
                pl.BlockSpec((tm, tk), lambda i, j, k: (i, k)),
                pl.BlockSpec((tk, tn), lambda i, j, k: (k, j)),
                pl.BlockSpec((1, tn), lambda i, j, k: (0, j)),
            ],
            out_specs=pl.BlockSpec((tm, tn), lambda i, j, k: (i, j)),
            scratch_shapes=[pltpu.VMEM((tm, tn), jnp.float32)],
        ),
        compiler_params=pltpu.CompilerParams(
            dimension_semantics=("parallel", "parallel", "arbitrary"),
            vmem_limit_bytes=_vmem_limit_bytes()),
    )(x, w, b)


# ---------------------------------------------------------------------------
# Flash-attention kernel (causal, online softmax, all heads per grid step)
# ---------------------------------------------------------------------------
def _make_flash_kernel(tq, tk, n_kv, approx_recip):
    def kernel(q_ref, k_ref, v_ref, o_ref, m_sc, l_sc, acc_sc):
        qi = pl.program_id(1)
        ki = pl.program_id(2)

        @pl.when(ki == 0)
        def _init():
            m_sc[...] = jnp.full_like(m_sc, -jnp.inf)
            l_sc[...] = jnp.zeros_like(l_sc)
            acc_sc[...] = jnp.zeros_like(acc_sc)

        q_start = qi * tq
        kv_start = ki * tk

        def scores():
            # Batched over heads (leading batch dim); 1/sqrt(D) already folded
            # into the Q projection weights in the wrapper.
            return jnp.einsum('hqd,hkd->hqk', q_ref[...], k_ref[...],
                              preferred_element_type=jnp.float32)

        def update(s):
            m_prev = m_sc[...]
            m_new = jnp.maximum(m_prev, jnp.max(s, axis=-1, keepdims=True))
            alpha = jnp.exp(m_prev - m_new)
            p = jnp.exp(s - m_new)
            l_sc[...] = alpha * l_sc[...] + jnp.sum(p, axis=-1, keepdims=True)
            acc_sc[...] = alpha * acc_sc[...] + jnp.einsum(
                'hqk,hkd->hqd', p.astype(v_ref.dtype), v_ref[...],
                preferred_element_type=jnp.float32)
            m_sc[...] = m_new

        # Tile fully at/below the diagonal: no mask work at all.
        @pl.when(kv_start + (tk - 1) <= q_start)
        def _unmasked():
            update(scores())

        # Diagonal-crossing tile: mask via broadcast of a (tq,1) and a (1,tk)
        # iota (no full (tq,tk) int32 tiles).  Tiles fully above the diagonal
        # match neither branch and are skipped entirely.
        @pl.when(jnp.logical_and(kv_start + (tk - 1) > q_start,
                                 kv_start <= q_start + (tq - 1)))
        def _masked():
            s = scores()
            rows = q_start + jax.lax.broadcasted_iota(jnp.int32, (tq, 1), 0)
            cols = kv_start + jax.lax.broadcasted_iota(jnp.int32, (1, tk), 1)
            keep = (rows >= cols)[None, :, :]          # (1, tq, tk) bool
            update(jnp.where(keep, s, jnp.float32(-1e30)))

        @pl.when(ki == n_kv - 1)
        def _finalize():
            inv_l = pl.reciprocal(l_sc[...], approx=approx_recip)
            o_ref[...] = (acc_sc[...] * inv_l).astype(o_ref.dtype)

    return kernel


def _flash_attention(q, k, v, out_dtype, tq=256, tk=128):
    """q, k, v: (B, H, T, D) -> (B, H, T, D)."""
    B, H, T, D = q.shape
    tq = _pick_tile(T, tq, align=8)
    tk = _pick_tile(T, tk, align=8)
    n_q, n_kv = T // tq, T // tk
    # EUP approx reciprocal on the perf (bf16) path; exact on the f32 path.
    approx = (q.dtype == jnp.bfloat16)
    kernel = _make_flash_kernel(tq, tk, n_kv, approx)

    def q_map(b, qi, ki):
        return (b, 0, qi, 0)

    def kv_map(b, qi, ki):
        # Clamp fully-masked (skipped) kv tiles to the last useful block so the
        # block index repeats and Pallas elides the redundant DMA.
        last_useful = (qi * tq + tq - 1) // tk
        return (b, 0, jnp.minimum(ki, last_useful), 0)

    # TODO(synk): walk only the lower-triangular (qi, ki) pairs via a
    # scalar-prefetched index table to eliminate the skipped upper-triangle
    # grid steps for long sequences.
    return pl.pallas_call(
        kernel,
        out_shape=jax.ShapeDtypeStruct((B, H, T, D), out_dtype),
        grid_spec=pltpu.PrefetchScalarGridSpec(
            num_scalar_prefetch=0,
            grid=(B, n_q, n_kv),
            in_specs=[
                pl.BlockSpec((None, H, tq, D), q_map),   # q (batch squeezed)
                pl.BlockSpec((None, H, tk, D), kv_map),  # k
                pl.BlockSpec((None, H, tk, D), kv_map),  # v
            ],
            out_specs=pl.BlockSpec((None, H, tq, D), q_map),
            scratch_shapes=[
                pltpu.VMEM((H, tq, 1), jnp.float32),   # running max  m
                pltpu.VMEM((H, tq, 1), jnp.float32),   # running sum  l
                pltpu.VMEM((H, tq, D), jnp.float32),   # output accumulator
            ],
        ),
        compiler_params=pltpu.CompilerParams(
            dimension_semantics=("parallel", "parallel", "arbitrary"),
            vmem_limit_bytes=_vmem_limit_bytes()),
    )(q, k, v)


# ---------------------------------------------------------------------------
# Full CausalSelfAttention forward
# ---------------------------------------------------------------------------
def causal_self_attention(x, w_attn, b_attn, w_proj, b_proj, n_head,
                          compute_dtype=jnp.bfloat16):
    """x: (B, T, C); w_attn: (3C, C); b_attn: (3C,); w_proj: (C, C); b_proj: (C,).

    compute_dtype: dtype of the MXU operands (bf16 by default).  Softmax and
    all accumulation stay in float32 regardless.
    """
    B, T, C = x.shape
    assert C % n_head == 0
    D = C // n_head
    dt = x.dtype if compute_dtype is None else compute_dtype

    # Fold 1/sqrt(D) into the Q rows of the c_attn weight/bias (exact, f32,
    # zero runtime cost) -- the flash kernel never scales per kv step.
    scale = 1.0 / math.sqrt(D)
    w_attn_f32 = w_attn.astype(jnp.float32).at[:C].multiply(scale)
    b_attn_f32 = b_attn.astype(jnp.float32).at[:C].multiply(scale)

    # Layout plumbing (outside kernels): weights pre-transposed to [in, out],
    # biases made 2-D, MXU operands cast to the compute dtype.
    x2 = x.reshape(B * T, C).astype(dt)
    w_attn_t = jnp.transpose(w_attn_f32).astype(dt)       # (C, 3C)
    w_proj_t = jnp.transpose(w_proj).astype(dt)           # (C, C)
    b_attn2 = b_attn_f32.reshape(1, 3 * C)
    b_proj2 = b_proj.reshape(1, C).astype(jnp.float32)

    # 1) QKV projection (tiled matmul).
    qkv = _dense(x2, w_attn_t, b_attn2, out_dtype=dt)     # (B*T, 3C)

    # 2) Head layout: (B*T, 3C) -> q/k/v each (B, H, T, D).
    # TODO(synk): fuse this split/merge into the flash kernel's BlockSpec
    # index_maps (reading q/k/v straight from the (B*T, 3C) buffer) to save
    # the extra HBM passes, and pack heads so output stores are 128-lane
    # dense when head_dim < 128.
    qkv = qkv.reshape(B, T, 3, n_head, D)
    q = qkv[:, :, 0].transpose(0, 2, 1, 3)                # (B, H, T, D)
    k = qkv[:, :, 1].transpose(0, 2, 1, 3)
    v = qkv[:, :, 2].transpose(0, 2, 1, 3)

    # 3) Flash attention, all heads per grid step, causal mask tile-gated.
    y = _flash_attention(q, k, v, out_dtype=dt)           # (B, H, T, D)

    # 4) Merge heads and output projection (tiled matmul).
    y = y.transpose(0, 2, 1, 3).reshape(B * T, C)
    out = _dense(y, w_proj_t, b_proj2, out_dtype=x.dtype)
    return out.reshape(B, T, C)


# ---------------------------------------------------------------------------
# Pure-JAX reference mirroring the PyTorch forward
# ---------------------------------------------------------------------------
def reference(x, w_attn, b_attn, w_proj, b_proj, n_head):
    B, T, C = x.shape
    D = C // n_head
    qkv = jnp.einsum('btc,oc->bto', x, w_attn) + b_attn          # (B,T,3C)
    q, k, v = jnp.split(qkv, 3, axis=2)
    q = q.reshape(B, T, n_head, D).transpose(0, 2, 1, 3)
    k = k.reshape(B, T, n_head, D).transpose(0, 2, 1, 3)
    v = v.reshape(B, T, n_head, D).transpose(0, 2, 1, 3)
    attn = jnp.einsum('bhqd,bhkd->bhqk', q, k) / math.sqrt(D)
    mask = jnp.tril(jnp.ones((T, T), bool))
    attn = jnp.where(mask[None, None], attn, -jnp.inf)
    attn = jax.nn.softmax(attn, axis=-1)
    y = jnp.einsum('bhqk,bhkd->bhqd', attn, v)
    y = y.transpose(0, 2, 1, 3).reshape(B, T, C)
    return jnp.einsum('btc,oc->bto', y, w_proj) + b_proj


if __name__ == "__main__":
    # Small GPT config: block_size >= T, n_embd=32, n_head=4
    B, T, C, n_head = 2, 8, 32, 4

    key = jax.random.PRNGKey(0)
    kx, k1, k2, k3, k4 = jax.random.split(key, 5)

    x = jax.random.normal(kx, (B, T, C), dtype=jnp.float32)
    w_attn = 0.02 * jax.random.normal(k1, (3 * C, C), dtype=jnp.float32)
    b_attn = 0.01 * jax.random.normal(k2, (3 * C,), dtype=jnp.float32)
    w_proj = 0.02 * jax.random.normal(k3, (C, C), dtype=jnp.float32)
    b_proj = 0.01 * jax.random.normal(k4, (C,), dtype=jnp.float32)

    ref = reference(x, w_attn, b_attn, w_proj, b_proj, n_head)

    # f32 MXU-operand path: tight check against the pure-JAX reference.
    out = causal_self_attention(x, w_attn, b_attn, w_proj, b_proj, n_head,
                                compute_dtype=jnp.float32)
    out = jax.block_until_ready(out)
    assert out.shape == (B, T, C)
    assert jnp.allclose(out, ref, atol=1e-4, rtol=1e-4), "f32 mismatch vs reference"

    # Production default: bf16 MXU operands, f32 softmax/accumulation.
    out_bf16 = causal_self_attention(x, w_attn, b_attn, w_proj, b_proj, n_head)
    out_bf16 = jax.block_until_ready(out_bf16)
    assert out_bf16.shape == (B, T, C)
    assert jnp.allclose(out_bf16, ref, atol=1e-2, rtol=5e-2), "bf16 mismatch vs reference"

    print("KERNEL_OK")
</pallas_src>

<mosaic_0001>
module attributes {stable_mosaic.version = 11 : i64} {
  func.func @_dense_kernel(%arg0: i32, %arg1: i32, %arg2: i32, %arg3: memref<16x32xf32, #tpu.memory_space<vmem>>, %arg4: memref<32x96xf32, #tpu.memory_space<vmem>>, %arg5: memref<1x96xf32, #tpu.memory_space<vmem>>, %arg6: memref<16x96xf32, #tpu.memory_space<vmem>>, %arg7: memref<16x96xf32, #tpu.memory_space<vmem>>) attributes {dimension_semantics = [#tpu.dimension_semantics<parallel>, #tpu.dimension_semantics<parallel>, #tpu.dimension_semantics<arbitrary>], iteration_bounds = array<i64: 1, 1, 1>, scalar_prefetch = 0 : i64, scratch_operands = 1 : i64, tpu.core_type = #tpu.core_type<tc>, window_params = [{transform_indices = @transform_0, window_bounds = array<i64: 16, 32>}, {transform_indices = @transform_1, window_bounds = array<i64: 32, 96>}, {transform_indices = @transform_2, window_bounds = array<i64: 1, 96>}, {transform_indices = @transform_3, window_bounds = array<i64: 16, 96>}]} {
    %c0_i32 = arith.constant 0 : i32
    %0 = arith.cmpi eq, %arg2, %c0_i32 : i32
    %1 = arith.extui %0 : i1 to i32
    %c0_i32_0 = arith.constant 0 : i32
    %2 = arith.cmpi ne, %1, %c0_i32_0 : i32
    scf.if %2 {
      %cst_10 = arith.constant 0.000000e+00 : f32
      %12 = vector.broadcast %cst_10 : f32 to vector<16x96xf32>
      %c0_11 = arith.constant 0 : index
      %c0_12 = arith.constant 0 : index
      %13 = vector.load %arg7[%c0_11, %c0_12] : memref<16x96xf32, #tpu.memory_space<vmem>>, vector<16x96xf32>
      tpu.vector_store %arg7[%c0_11, %c0_12], %12 {strides = array<i32>} : memref<16x96xf32, #tpu.memory_space<vmem>>, vector<16x96xf32>,
    } else {
    }
    %c0 = arith.constant 0 : index
    %c0_1 = arith.constant 0 : index
    %3 = vector.load %arg7[%c0, %c0_1] : memref<16x96xf32, #tpu.memory_space<vmem>>, vector<16x96xf32>
    %c0_2 = arith.constant 0 : index
    %c0_3 = arith.constant 0 : index
    %4 = vector.load %arg3[%c0_2, %c0_3] : memref<16x32xf32, #tpu.memory_space<vmem>>, vector<16x32xf32>
    %c0_4 = arith.constant 0 : index
    %c0_5 = arith.constant 0 : index
    %5 = vector.load %arg4[%c0_4, %c0_5] : memref<32x96xf32, #tpu.memory_space<vmem>>, vector<32x96xf32>
    %cst = arith.constant dense<0.000000e+00> : vector<16x96xf32>
    %6 = tpu.matmul %4, %5, %cst {dimension_numbers = #tpu.dot_dimension_numbers<[1], [0], [0], [1], [0, 0, 1, 1], [], []>} : vector<16x32xf32>, vector<32x96xf32>, vector<16x96xf32> -> vector<16x96xf32>
    %7 = arith.addf %3, %6 : vector<16x96xf32>
    %c0_6 = arith.constant 0 : index
    %c0_7 = arith.constant 0 : index
    %8 = vector.load %arg7[%c0_6, %c0_7] : memref<16x96xf32, #tpu.memory_space<vmem>>, vector<16x96xf32>
    tpu.vector_store %arg7[%c0_6, %c0_7], %7 {strides = array<i32>} : memref<16x96xf32, #tpu.memory_space<vmem>>, vector<16x96xf32>,
    %c0_i32_8 = arith.constant 0 : i32
    %9 = arith.cmpi eq, %arg2, %c0_i32_8 : i32
    %10 = arith.extui %9 : i1 to i32
    %c0_i32_9 = arith.constant 0 : i32
    %11 = arith.cmpi ne, %10, %c0_i32_9 : i32
    scf.if %11 {
      %c0_10 = arith.constant 0 : index
      %c0_11 = arith.constant 0 : index
      %12 = vector.load %arg7[%c0_10, %c0_11] : memref<16x96xf32, #tpu.memory_space<vmem>>, vector<16x96xf32>
      %c0_12 = arith.constant 0 : index
      %c0_13 = arith.constant 0 : index
      %13 = vector.load %arg5[%c0_12, %c0_13] : memref<1x96xf32, #tpu.memory_space<vmem>>, vector<1x96xf32>
      %14 = vector.broadcast %13 : vector<1x96xf32> to vector<16x96xf32>
      %15 = arith.addf %12, %14 : vector<16x96xf32>
      %c0_14 = arith.constant 0 : index
      %c0_15 = arith.constant 0 : index
      %16 = vector.load %arg6[%c0_14, %c0_15] : memref<16x96xf32, #tpu.memory_space<vmem>>, vector<16x96xf32>
      tpu.vector_store %arg6[%c0_14, %c0_15], %15 {strides = array<i32>} : memref<16x96xf32, #tpu.memory_space<vmem>>, vector<16x96xf32>,
    } else {
    }
    return
  }
  func.func @transform_0(%arg0: i32, %arg1: i32, %arg2: i32) -> (i32, i32) {
    %c0_i32 = arith.constant 0 : i32
    return %arg0, %arg2 : i32, i32
  }
  func.func @transform_1(%arg0: i32, %arg1: i32, %arg2: i32) -> (i32, i32) {
    %c0_i32 = arith.constant 0 : i32
    return %arg2, %arg1 : i32, i32
  }
  func.func @transform_2(%arg0: i32, %arg1: i32, %arg2: i32) -> (i32, i32) {
    %c0_i32 = arith.constant 0 : i32
    %c0_i32_0 = arith.constant 0 : i32
    return %c0_i32, %arg1 : i32, i32
  }
  func.func @transform_3(%arg0: i32, %arg1: i32, %arg2: i32) -> (i32, i32) {
    %c0_i32 = arith.constant 0 : i32
    return %arg0, %arg1 : i32, i32
  }
}

</mosaic_0001>

<bundles_post_ra>
// kernel: tpu_custom_call.1
= control target key start
LH: loop header
LB: loop body
LE: loop exit
PB: predicated region body
PF: predicated region fallthrough
CT: control target
= control target key end

     0   :  { %8 = vsyncpa [#allocation4], 0  ;;  %s326_s0 = inlined_call_operand.hbm [shape: f32[16,32], index: 0, kind: input, shape index: {}]   ;;  %s327_s1 = inlined_call_operand.hbm [shape: f32[32,96], index: 1, kind: input, shape index: {}]   ;;  %s328_s2 = inlined_call_operand.vmem [shape: f32[1,96], index: 2, kind: input, shape index: {}]   ;;  %s329_s3 = inlined_call_operand.hbm [shape: f32[16,96], index: 3, kind: output, shape index: {}]  }
   0x1   :  { %9 = vsyncpa [#allocation7], 0 }
   0x2   :  { %10 = vsyncpa [#allocation5], 0  ;;  %s271_s12 = smov [#allocation3]  }
   0x3   :  { %s16_s13 = sshll.u32 %s271_s12, 4  ;;  %s17_s13 = int_to_ptr.vmem [resolvable:$true] %s16_s13 }
   0x4   :  { %s213_s14 = scalar_lea.vmem %s17_s13, 256  ;;  %p218_p1 = scmp.lt.s32.totalorder %s17_s13, %s17_s13 }
   0x5   :  { %p214_p0 = scmp.ne.s32.totalorder %s17_s13, %s213_s14  ;;  %p219_p2 = scmp.lt.s32.totalorder %s213_s14, %s213_s14 }
   0x7   :  { %p220_p3 = por %p219_p2, %p218_p1 }
   0x9   :  { %p221_p4 = pnand %p220_p3, %p214_p0 }
   0xb   :  { %224 = shalt.err (!%p221_p4)
}
   0xc   :  { %s272_s15 = smov 128   ;;  %s273_s16 = smov 8  }
   0xd   :  { %22 = dma.hbm_to_vmem [thread:$0]  %s326_s0, 256, %s17_s13, [#allocation4], %s272_s15, %s272_s15, %s273_s16  }
   0xe   :  { %s274_s19 = smov [#allocation6]  }
   0xf   :  { %s28_s20 = sshll.u32 %s274_s19, 4  ;;  %s29_s20 = int_to_ptr.vmem [resolvable:$true] %s28_s20 }
  0x10   :  { %s233_s21 = scalar_lea.vmem %s29_s20, 512  ;;  %p238_p6 = scmp.lt.s32.totalorder %s29_s20, %s29_s20 }
  0x11   :  { %p234_p5 = scmp.ne.s32.totalorder %s29_s20, %s233_s21  ;;  %p239_p7 = scmp.lt.s32.totalorder %s233_s21, %s233_s21 }
  0x13   :  { %p240_p8 = por %p239_p7, %p238_p6 }
  0x15   :  { %p241_p9 = pnand %p240_p8, %p234_p5 }
  0x17   :  { %244 = shalt.err (!%p241_p9)
}
  0x18   :  { %34 = dma.hbm_to_vmem [thread:$0]  %s327_s1, 512, %s29_s20, [#allocation7], %s272_s15, %s272_s15, %s273_s16  }
  0x19   :  { %265 = dma.done.wait [#allocation4], 256  }
  0x1a   :  { %266 = vsyncadd [#allocation4], 4294967040 }
  0x1b   :  { %267 = dma.done.wait [#allocation7], 512  }
  0x1c   :  { %268 = vsyncadd [#allocation7], 4294966784  ;;  %vm47_vm0 = vcmask 785408   ;;  %v275_v0 = vmov 0.0   ;;  %vm58_vm1 = vcmask 261120   ;;  %v57_v1 = vld [vmem:[#allocation6 + $0x18] sm:$0xff] }
  0x1d   :  { %49 = vst.msk [vmem:[#allocation2 + $0x8] sm:$0xff] %vm47_vm0, %v275_v0  ;;  %48 = vst.msk [vmem:[#allocation2] sm:$0xff] %vm47_vm0, %v275_v0  ;;  %v56_v2 = vld [vmem:[#allocation6 + $0x10] sm:$0xff]  ;;  %188 = vmatprep.subr.mxu0 %v57_v1  ;;  %v55_v4 = vld [vmem:[#allocation6 + $0x8] sm:$0xff]  ;;  %s276_s24 = smov [#allocation8]  }
  0x1e   :  { %v52_v3 = vld [vmem:[#allocation3] sm:$0xff]  ;;  %189 = vmatpush3.msra.mxu0 %v57_v1  ;;  %v54_v5 = vld [vmem:[#allocation6] sm:$0xff]  ;;  %v53_v6 = vld [vmem:[#allocation3 + $0x8] sm:$0xff]  ;;  %s166_s25 = sshll.u32 %s276_s24, 4  ;;  %s167_s25 = int_to_ptr.vmem [resolvable:$true] %s166_s25 }
  0x1f   :  { %196 = vmatprep.mubr.msk.f32.mxu0 %vm58_vm1, %v52_v3  ;;  %190 = vmatprep.subr.mxu0 %v56_v2  ;;  %v181_v13 = vld [vmem:[%s328_s2] ss:$0 sm:$0xff]  ;;  %s245_s26 = scalar_lea.vmem %s167_s25, 256  ;;  %p250_p11 = scmp.lt.s32.totalorder %s167_s25, %s167_s25 }
  0x20   :  { %191 = vmatpush3.msra.mxu0 %v56_v2  ;;  %p246_p10 = scmp.ne.s32.totalorder %s167_s25, %s245_s26  ;;  %p251_p12 = scmp.lt.s32.totalorder %s245_s26, %s245_s26 }
  0x21   :  { %192 = vmatprep.subr.mxu0 %v55_v4 }
  0x22   :  { %193 = vmatpush3.msra.mxu0 %v55_v4  ;;  %p252_p13 = por %p251_p12, %p250_p11 }
  0x23   :  { %194 = vmatprep.subr.mxu0 %v54_v5 }
  0x24   :  { %195 = vmatpush3.msra.mxu0 %v54_v5  ;;  %v51_v7 = vld [vmem:[#allocation2 + $0x8] sm:$0xff]  ;;  %v50_v9 = vld [vmem:[#allocation2] sm:$0xff]  ;;  %p253_p0 = pnand %p252_p13, %p246_p10 }
  0x25   :  { %197 = vmatmul.mubr.msk.f32.vlgmr.msra.gmra.mxu0 %vm58_vm1, %v53_v6 }
  0xe5   :  { %v198_v8 = vpop.f32.mrf.mxu0 }
  0xe6   :  { %v141_v10 = vadd.f32 %v198_v8, %v51_v7 }
  0xe7   :  { %v131_v11 = vpop.f32.mrf.mxu0 }
  0xe8   :  { %144 = vst.msk [vmem:[#allocation2 + $0x8] sm:$0xff] %vm47_vm0, %v141_v10  ;;  %v140_v12 = vadd.f32 %v131_v11, %v50_v9 }
  0xea   :  { %143 = vst.msk [vmem:[#allocation2] sm:$0xff] %vm47_vm0, %v140_v12 }
  0xef   :  { %v149_v14 = vld [vmem:[#allocation2 + $0x8] sm:$0xff] }
  0xf0   :  { %v158_v15 = vadd.f32 %v181_v13, %v149_v14 }
  0xf1   :  { %v148_v16 = vld [vmem:[#allocation2] sm:$0xff] }
  0xf2   :  { %v157_v17 = vadd.f32 %v181_v13, %v148_v16  ;;  %160 = vst.msk [vmem:[#allocation8 + $0x8] sm:$0xff] %vm47_vm0, %v158_v15 }
  0xf4   :  { %159 = vst.msk [vmem:[#allocation8] sm:$0xff] %vm47_vm0, %v157_v17 }
  0xf5   :  { %256 = shalt.err (!%p253_p0)
}
  0xf6   :  { %172 = dma.vmem_to_hbm [thread:$0]  %s167_s25, 256, %s329_s3, [#allocation5], %s272_s15, %s272_s15, %s273_s16  }
  0xf7   :  { %269 = dma.done.wait [#allocation5], 256  }
  0xf8   :  { %270 = vsyncadd [#allocation5], 4294967040 }
  0xf9   :  { %176 = vsyncpa [#allocation4], 1 }
  0xfa   :  { %177 = vsyncpa [#allocation7], 1 }
  0xfb   :  { %178 = vsyncpa [#allocation5], 1 }

</bundles_post_ra>
